<compile_context>
chip_gen: v6e
topology: v6e:2x2x1
jax: 0.10.0
libtpu: 0.0.40
codegen_flags: <defaults>
</compile_context>

<pallas_src>
import functools
import math

import jax
import jax.numpy as jnp
from jax.experimental import pallas as pl
from jax.experimental.pallas import tpu as pltpu


def _round_up(x, n):
    return -(-x // n) * n


def _angular_penalty_kernel(wf_ref, labels_ref, tgt_ref, out_ref, exp_acc, *,
                            s, m, eps, loss_type, B, C, TB, TC, LANES):
    i = pl.program_id(0)            # batch-tile index ("parallel")
    k = pl.program_id(1)            # class-tile index (reduction, last grid axis)
    nk = pl.num_programs(1)

    @pl.when(k == 0)
    def _init():
        exp_acc[...] = jnp.zeros_like(exp_acc)

    wf = wf_ref[...].astype(jnp.float32)        # (TB, TC) upcast per tile
    labels = labels_ref[...]                    # (TB, 1) int32

    # Global column ids of this tile: used only to EXCLUDE the target column from
    # the exp-sum (keeps excl exact — no subtract-after-sum cancellation).
    col = jax.lax.broadcasted_iota(jnp.int32, (TB, TC), 1) + k * TC

    def accumulate(mask_tail):
        keep = col != labels
        if mask_tail:
            # Padded class lanes of the ragged last tile must not contribute.
            keep = jnp.logical_and(keep, col < C)
        e = jnp.where(keep, jnp.exp(s * wf), 0.0)
        if LANES == 1:
            exp_acc[...] += jnp.sum(e, axis=1, keepdims=True)
        else:
            # Lane-wise accumulation: 128-aligned static slices are pure vreg
            # selection, so the hot loop is VALU adds only; the single
            # cross-lane (XLU) reduction happens once in the epilogue.
            acc = exp_acc[...]
            for j in range(TC // LANES):
                acc = acc + e[:, j * LANES:(j + 1) * LANES]
            exp_acc[...] = acc

    if C % TC != 0:
        # Only the last class tile pays the extra lane-validity mask.
        @pl.when(k == nk - 1)
        def _masked():
            accumulate(True)

        @pl.when(k < nk - 1)
        def _unmasked():
            accumulate(False)
    else:
        accumulate(False)

    @pl.when(k == nk - 1)
    def _epilogue():
        if LANES == 1:
            excl = exp_acc[...]                                   # (TB, 1)
        else:
            excl = jnp.sum(exp_acc[...], axis=1, keepdims=True)   # (TB, 1)
        target = tgt_ref[...]                                     # (TB, 1) f32

        if loss_type == 'cosface':
            numerator = s * (target - m)
        elif loss_type == 'arcface':
            # s*cos(acos(x)+m) == s*(x*cos(m) - sqrt(1-x^2)*sin(m))  (exact, no acos)
            x = jnp.clip(target, -1.0 + eps, 1.0 - eps)
            numerator = s * (x * math.cos(m) - jnp.sqrt(1.0 - x * x) * math.sin(m))
        elif loss_type == 'sphereface':
            # TODO(synk): relies on Mosaic lowering of arccos inside the kernel
            # (epilogue-only, (TB,1) vector); not exercised in the demo below.
            x = jnp.clip(target, -1.0 + eps, 1.0 - eps)
            numerator = s * jnp.cos(m * jnp.arccos(x))
        else:
            raise ValueError(loss_type)

        L = numerator - jnp.log(jnp.exp(numerator) + excl)        # (TB, 1)

        # Rows past B (partial batch tile) hold garbage; zero them.  The clipped
        # writeback would drop them anyway, this just keeps NaNs out of VMEM.
        row = jax.lax.broadcasted_iota(jnp.int32, (TB, 1), 0) + i * TB
        out_ref[...] = jnp.where(row < B, L, 0.0)


def angular_penalty_sm_loss(wf, labels, loss_type='cosface', eps=1e-7, s=20, m=0,
                            block_b=512, block_c=8192, vmem_limit_bytes=None):
    """JAX/Pallas equivalent of AngularPenaltySMLoss.forward (non-crossentropy path)."""
    loss_type = loss_type.lower()
    assert loss_type in ['arcface', 'sphereface', 'cosface', 'crossentropy']
    # Reproduce the (falsy-default) parameter resolution from __init__.
    if loss_type == 'arcface':
        s_ = 64.0 if not s else float(s)
        m_ = 0.5 if not m else float(m)
    elif loss_type == 'sphereface':
        s_ = 64.0 if not s else float(s)
        m_ = 1.35 if not m else float(m)
    elif loss_type == 'cosface':
        s_ = 20.0 if not s else float(s)
        m_ = 0.0 if not m else float(m)
    else:
        # TODO(synk): plain nn.CrossEntropyLoss branch not implemented as a Pallas kernel.
        raise NotImplementedError("crossentropy branch not implemented")

    B, C = wf.shape
    dsize = jnp.dtype(wf.dtype).itemsize
    min_rows = {1: 32, 2: 16}.get(dsize, 8)   # sublane packing granularity

    # ---- tile selection (no HBM padding; ragged edge blocks masked in-kernel) ----
    if B > block_b:
        TB = _round_up(block_b, min_rows)
    else:
        # Aim for >= 2 batch tiles so the "parallel" axis shards across v7x's 2 TCs.
        TB = _round_up(pl.cdiv(B, 2), min_rows)
        if TB >= B:
            TB = B        # single full-batch block (legal for any B: block == array dim)
    if C > block_c:
        TC = _round_up(block_c, 128)
    else:
        TC = C            # single full-extent class block (legal for any C)
    nb = pl.cdiv(B, TB)
    nk = pl.cdiv(C, TC)
    LANES = 128 if TC % 128 == 0 else 1

    labels2d = labels.astype(jnp.int32).reshape(B, 1)
    # Cheap O(B) XLA gather for the target logit; removes the per-tile one-hot
    # gather + cross-lane reduction from the kernel's hot loop.
    tgt = jnp.take_along_axis(wf, labels2d, axis=1).astype(jnp.float32)

    if vmem_limit_bytes is None:
        # wf tiles (double-buffered) dominate VMEM; labels/tgt/out/scratch are O(TB).
        # Defaults (512, 8192) f32 -> ~34 MiB: fits v7x (64 MiB physical) and is
        # far under v5e/v6e (128 MiB physical, 16/32 MiB scoped default).
        vmem_limit_bytes = max(2 * TB * TC * dsize + (2 << 20), 16 << 20)

    kernel = functools.partial(
        _angular_penalty_kernel, s=s_, m=m_, eps=float(eps),
        loss_type=loss_type, B=B, C=C, TB=TB, TC=TC, LANES=LANES)

    cost = pl.CostEstimate(
        flops=6 * B * C,
        transcendentals=B * C,
        bytes_accessed=B * C * dsize + 3 * B * 4)

    per_row_L = pl.pallas_call(
        kernel,
        out_shape=jax.ShapeDtypeStruct((B, 1), jnp.float32),
        grid_spec=pltpu.PrefetchScalarGridSpec(
            num_scalar_prefetch=0,
            grid=(nb, nk),
            in_specs=[
                pl.BlockSpec((TB, TC), lambda i, k: (i, k)),   # wf tile
                pl.BlockSpec((TB, 1), lambda i, k: (i, 0)),    # labels per B block
                pl.BlockSpec((TB, 1), lambda i, k: (i, 0)),    # target logit per B block
            ],
            out_specs=pl.BlockSpec((TB, 1), lambda i, k: (i, 0)),
            scratch_shapes=[pltpu.VMEM((TB, LANES), jnp.float32)],  # lane-wise exp-sum acc
        ),
        compiler_params=pltpu.CompilerParams(
            dimension_semantics=("parallel", "arbitrary"),
            vmem_limit_bytes=vmem_limit_bytes),
        cost_estimate=cost,
    )(wf, labels2d, tgt)

    return -jnp.sum(per_row_L) / float(B)


def _reference_loss(wf, labels, loss_type, s, m, eps=1e-7):
    # Pure-JAX reference of the torch forward for sanity checking.
    B = wf.shape[0]
    wf = wf.astype(jnp.float32)
    tgt = wf[jnp.arange(B), labels]
    if loss_type == 'cosface':
        numerator = s * (tgt - m)
    elif loss_type == 'arcface':
        numerator = s * jnp.cos(jnp.arccos(jnp.clip(tgt, -1.0 + eps, 1.0 - eps)) + m)
    elif loss_type == 'sphereface':
        numerator = s * jnp.cos(m * jnp.arccos(jnp.clip(tgt, -1.0 + eps, 1.0 - eps)))
    mask = jax.nn.one_hot(labels, wf.shape[1], dtype=bool)
    excl = jnp.sum(jnp.where(mask, 0.0, jnp.exp(s * wf)), axis=1)
    L = numerator - jnp.log(jnp.exp(numerator) + excl)
    return -jnp.mean(L)


if __name__ == "__main__":
    key = jax.random.PRNGKey(0)
    k1, k2, k3, k4, k5, k6 = jax.random.split(key, 6)

    # --- small single-tile case (B=8, C=16) ---
    B, C = 8, 16
    wf = jax.random.uniform(k1, (B, C), dtype=jnp.float32, minval=-1.0, maxval=1.0)
    labels = jax.random.randint(k2, (B,), 0, C, dtype=jnp.int32)

    loss_cos = jax.block_until_ready(
        angular_penalty_sm_loss(wf, labels, loss_type='cosface', s=20, m=0))
    ref_cos = jax.block_until_ready(_reference_loss(wf, labels, 'cosface', 20.0, 0.0))
    assert jnp.allclose(loss_cos, ref_cos, rtol=1e-4, atol=1e-4), (loss_cos, ref_cos)

    # arcface (falsy defaults -> s=64, m=0.5): exercises the exact-excl path where
    # the target term dominates, plus the sqrt-identity numerator.
    loss_arc = jax.block_until_ready(
        angular_penalty_sm_loss(wf, labels, loss_type='arcface', s=0, m=0))
    ref_arc = jax.block_until_ready(_reference_loss(wf, labels, 'arcface', 64.0, 0.5))
    assert jnp.allclose(loss_arc, ref_arc, rtol=2e-3, atol=2e-3), (loss_arc, ref_arc)

    # --- multi-tile case with ragged edges on BOTH axes (B=24, C=300, TC=128) ---
    B2, C2 = 24, 300
    wf2 = jax.random.uniform(k3, (B2, C2), dtype=jnp.float32, minval=-1.0, maxval=1.0)
    labels2 = jax.random.randint(k4, (B2,), 0, C2, dtype=jnp.int32)
    loss_t = jax.block_until_ready(
        angular_penalty_sm_loss(wf2, labels2, loss_type='cosface', s=20, m=0,
                                block_b=512, block_c=128))
    ref_t = jax.block_until_ready(_reference_loss(wf2, labels2, 'cosface', 20.0, 0.0))
    assert jnp.allclose(loss_t, ref_t, rtol=1e-4, atol=1e-4), (loss_t, ref_t)

    # --- bf16 input, multi-tile (kernel upcasts per tile before exp) ---
    B3, C3 = 32, 300
    wf3 = jax.random.uniform(k5, (B3, C3), dtype=jnp.float32,
                             minval=-1.0, maxval=1.0).astype(jnp.bfloat16)
    labels3 = jax.random.randint(k6, (B3,), 0, C3, dtype=jnp.int32)
    loss_bf = jax.block_until_ready(
        angular_penalty_sm_loss(wf3, labels3, loss_type='cosface', s=20, m=0,
                                block_b=512, block_c=128))
    ref_bf = jax.block_until_ready(
        _reference_loss(wf3.astype(jnp.float32), labels3, 'cosface', 20.0, 0.0))
    assert jnp.allclose(loss_bf, ref_bf, rtol=1e-3, atol=1e-3), (loss_bf, ref_bf)

    print("KERNEL_OK")
</pallas_src>

<mosaic_0001>
module attributes {stable_mosaic.version = 11 : i64} {
  func.func @_angular_penalty_kernel(%arg0: i32, %arg1: i32, %arg2: memref<8x16xf32, #tpu.memory_space<vmem>>, %arg3: memref<8x1xi32, #tpu.memory_space<vmem>>, %arg4: memref<8x1xf32, #tpu.memory_space<vmem>>, %arg5: memref<8x1xf32, #tpu.memory_space<vmem>>, %arg6: memref<8x1xf32, #tpu.memory_space<vmem>>) attributes {dimension_semantics = [#tpu.dimension_semantics<parallel>, #tpu.dimension_semantics<arbitrary>], iteration_bounds = array<i64: 1, 1>, scalar_prefetch = 0 : i64, scratch_operands = 1 : i64, tpu.core_type = #tpu.core_type<tc>, window_params = [{transform_indices = @transform_0, window_bounds = array<i64: 8, 16>}, {transform_indices = @transform_1, window_bounds = array<i64: 8, 1>}, {transform_indices = @transform_2, window_bounds = array<i64: 8, 1>}, {transform_indices = @transform_3, window_bounds = array<i64: 8, 1>}]} {
    %c0_i32 = arith.constant 0 : i32
    %0 = arith.cmpi eq, %arg1, %c0_i32 : i32
    %1 = arith.extui %0 : i1 to i32
    %c0_i32_0 = arith.constant 0 : i32
    %2 = arith.cmpi ne, %1, %c0_i32_0 : i32
    scf.if %2 {
      %cst_12 = arith.constant 0.000000e+00 : f32
      %24 = vector.broadcast %cst_12 : f32 to vector<8x1xf32>
      %c0_13 = arith.constant 0 : index
      %c0_14 = arith.constant 0 : index
      %25 = vector.load %arg6[%c0_13, %c0_14] : memref<8x1xf32, #tpu.memory_space<vmem>>, vector<8x1xf32>
      tpu.vector_store %arg6[%c0_13, %c0_14], %24 {strides = array<i32>} : memref<8x1xf32, #tpu.memory_space<vmem>>, vector<8x1xf32>,
    } else {
    }
    %c0 = arith.constant 0 : index
    %c0_1 = arith.constant 0 : index
    %3 = vector.load %arg2[%c0, %c0_1] : memref<8x16xf32, #tpu.memory_space<vmem>>, vector<8x16xf32>
    %c0_2 = arith.constant 0 : index
    %c0_3 = arith.constant 0 : index
    %4 = vector.load %arg3[%c0_2, %c0_3] : memref<8x1xi32, #tpu.memory_space<vmem>>, vector<8x1xi32>
    %5 = tpu.iota {dimensions = array<i32: 1>} : vector<8x16xi32>
    %c16_i32 = arith.constant 16 : i32
    %6 = arith.muli %arg1, %c16_i32 : i32
    %7 = vector.broadcast %6 : i32 to vector<8x16xi32>
    %8 = arith.addi %5, %7 : vector<8x16xi32>
    %9 = vector.broadcast %4 : vector<8x1xi32> to vector<8x16xi32>
    %10 = arith.cmpi ne, %8, %9 : vector<8x16xi32>
    %cst = arith.constant 2.000000e+01 : f32
    %11 = vector.broadcast %cst : f32 to vector<8x16xf32>
    %12 = arith.mulf %11, %3 : vector<8x16xf32>
    %13 = math.exp %12 : vector<8x16xf32>
    %cst_4 = arith.constant 0.000000e+00 : f32
    %14 = vector.broadcast %cst_4 : f32 to vector<8x16xf32>
    %15 = arith.select %10, %13, %14 : vector<8x16xi1>, vector<8x16xf32>
    %c0_5 = arith.constant 0 : index
    %c0_6 = arith.constant 0 : index
    %16 = vector.load %arg6[%c0_5, %c0_6] : memref<8x1xf32, #tpu.memory_space<vmem>>, vector<8x1xf32>
    %cst_7 = arith.constant dense<0.000000e+00> : vector<8xf32>
    %17 = vector.multi_reduction <add>, %15, %cst_7 [1] : vector<8x16xf32> to vector<8xf32>
    %18 = vector.shape_cast %17 : vector<8xf32> to vector<8x1xf32>
    %19 = arith.addf %16, %18 : vector<8x1xf32>
    %c0_8 = arith.constant 0 : index
    %c0_9 = arith.constant 0 : index
    %20 = vector.load %arg6[%c0_8, %c0_9] : memref<8x1xf32, #tpu.memory_space<vmem>>, vector<8x1xf32>
    tpu.vector_store %arg6[%c0_8, %c0_9], %19 {strides = array<i32>} : memref<8x1xf32, #tpu.memory_space<vmem>>, vector<8x1xf32>,
    %c0_i32_10 = arith.constant 0 : i32
    %21 = arith.cmpi eq, %arg1, %c0_i32_10 : i32
    %22 = arith.extui %21 : i1 to i32
    %c0_i32_11 = arith.constant 0 : i32
    %23 = arith.cmpi ne, %22, %c0_i32_11 : i32
    scf.if %23 {
      %c0_12 = arith.constant 0 : index
      %c0_13 = arith.constant 0 : index
      %24 = vector.load %arg6[%c0_12, %c0_13] : memref<8x1xf32, #tpu.memory_space<vmem>>, vector<8x1xf32>
      %c0_14 = arith.constant 0 : index
      %c0_15 = arith.constant 0 : index
      %25 = vector.load %arg4[%c0_14, %c0_15] : memref<8x1xf32, #tpu.memory_space<vmem>>, vector<8x1xf32>
      %cst_16 = arith.constant 0.000000e+00 : f32
      %26 = vector.broadcast %cst_16 : f32 to vector<8x1xf32>
      %27 = arith.subf %25, %26 : vector<8x1xf32>
      %cst_17 = arith.constant 2.000000e+01 : f32
      %28 = vector.broadcast %cst_17 : f32 to vector<8x1xf32>
      %29 = arith.mulf %28, %27 : vector<8x1xf32>
      %30 = math.exp %29 : vector<8x1xf32>
      %31 = arith.addf %30, %24 : vector<8x1xf32>
      %32 = math.log %31 : vector<8x1xf32>
      %33 = arith.subf %29, %32 : vector<8x1xf32>
      %34 = tpu.iota {dimensions = array<i32: 0>} : vector<8x1xi32>
      %c8_i32 = arith.constant 8 : i32
      %35 = arith.muli %arg0, %c8_i32 : i32
      %36 = vector.broadcast %35 : i32 to vector<8x1xi32>
      %37 = arith.addi %34, %36 : vector<8x1xi32>
      %c8_i32_18 = arith.constant 8 : i32
      %38 = vector.broadcast %c8_i32_18 : i32 to vector<8x1xi32>
      %39 = arith.cmpi slt, %37, %38 : vector<8x1xi32>
      %cst_19 = arith.constant 0.000000e+00 : f32
      %40 = vector.broadcast %cst_19 : f32 to vector<8x1xf32>
      %41 = arith.select %39, %33, %40 : vector<8x1xi1>, vector<8x1xf32>
      %c0_20 = arith.constant 0 : index
      %c0_21 = arith.constant 0 : index
      %42 = vector.load %arg5[%c0_20, %c0_21] : memref<8x1xf32, #tpu.memory_space<vmem>>, vector<8x1xf32>
      tpu.vector_store %arg5[%c0_20, %c0_21], %41 {strides = array<i32>} : memref<8x1xf32, #tpu.memory_space<vmem>>, vector<8x1xf32>,
    } else {
    }
    return
  }
  func.func @transform_0(%arg0: i32, %arg1: i32) -> (i32, i32) {
    %c0_i32 = arith.constant 0 : i32
    return %arg0, %arg1 : i32, i32
  }
  func.func @transform_1(%arg0: i32, %arg1: i32) -> (i32, i32) {
    %c0_i32 = arith.constant 0 : i32
    %c0_i32_0 = arith.constant 0 : i32
    return %arg0, %c0_i32 : i32, i32
  }
  func.func @transform_2(%arg0: i32, %arg1: i32) -> (i32, i32) {
    %c0_i32 = arith.constant 0 : i32
    %c0_i32_0 = arith.constant 0 : i32
    return %arg0, %c0_i32 : i32, i32
  }
  func.func @transform_3(%arg0: i32, %arg1: i32) -> (i32, i32) {
    %c0_i32 = arith.constant 0 : i32
    %c0_i32_0 = arith.constant 0 : i32
    return %arg0, %c0_i32 : i32, i32
  }
}

</mosaic_0001>

<bundles_post_ra>
// kernel: tpu_custom_call.1
= control target key start
LH: loop header
LB: loop body
LE: loop exit
PB: predicated region body
PF: predicated region fallthrough
CT: control target
= control target key end

     0   :  { %v76_v0 = vmov 0   ;;  %vm18_vm0 = vcmask 7168   ;;  %v77_v2 = vmov 0.0   ;;  %v22_v6 = vlaneseq  ;;  %s113_s1 = inlined_call_operand.vmem [shape: s32[8,1], index: 1, kind: input, shape index: {}]   ;;  %s114_s0 = inlined_call_operand.vmem [shape: f32[8,16], index: 0, kind: input, shape index: {}]   ;;  %s115_s2 = inlined_call_operand.vmem [shape: f32[8,1], index: 2, kind: input, shape index: {}]   ;;  %s116_s3 = inlined_call_operand.vmem [shape: f32[8,1], index: 3, kind: output, shape index: {}]  }
   0x1   :  { %69 = vset.pattern.permute.xlu0 %v76_v0  ;;  %v21_v1 = vld [vmem:[%s113_s1] sm:$0xff]  ;;  %19 = vst.msk [vmem:[#allocation2] sm:$0xff] %vm18_vm0, %v77_v2  ;;  %vm36_vm1 = vcmask 130048  }
   0x2   :  { %28 = vperm.xlu0 %69, %v21_v1   ;;  %v20_v3 = vld [vmem:[%s114_s0] sm:$0xff]  ;;  %v23_v7 = vand.u32 127, %v22_v6 }
   0x3   :  { %v31_v4 = vmul.f32 20.0, %v20_v3  ;;  %v47_v12 = vld [vmem:[%s115_s2] sm:$0xff] }
   0x4   :  { %v48_v13 = vmul.f32 20.0, %v47_v12 }
   0x5   :  { %v32_v5 = vmul.f32 1.442695, %v31_v4 }
   0x6   :  { %v49_v14 = vmul.f32 1.442695, %v48_v13 }
   0x7   :  { %70 = vpow2.f32 %v32_v5 }
   0x8   :  { %72 = vpow2.f32 %v49_v14  ;;  %v35_v15 = vld [vmem:[#allocation2] sm:$0xff] }
  0x14   :  { %v71_v8 = vpop.eup %70 }
  0x15   :  { %v73_v18 = vpop.eup %72 }
  0x7d   :  { %v29_v9 = vpop.permute.xlu0 %28 }
  0x7e   :  { %vm30_vm2 = vcmp.ne.s32.totalorder %v23_v7, %v29_v9 }
  0x7f   :  { %v34_v10 = vsel %vm30_vm2, %v71_v8, 0.0 }
  0x80   :  { %v37_v11 = vsel %vm36_vm1, %v34_v10, 0.0 }
  0x81   :  { %38 = vadd.xlane.f32.xlu0 %v37_v11 }
 0x10a   :  { %v39_v16 = vpop.xlane.xlu0 %38 }
 0x10b   :  { %v40_v17 = vadd.f32 %v39_v16, %v35_v15 }
 0x10d   :  { %42 = vst.msk [vmem:[#allocation2] sm:$0xff] %vm18_vm0, %v40_v17 }
 0x114   :  { %v46_v19 = vld [vmem:[#allocation2] sm:$0xff] }
 0x115   :  { %v51_v20 = vadd.f32 %v73_v18, %v46_v19 }
 0x117   :  { %74 = vlog2.f32 %v51_v20 }
 0x124   :  { %v75_v21 = vpop.eup %74 }
 0x125   :  { %v53_v22 = vmul.f32 0.6931472, %v75_v21 }
 0x127   :  { %v54_v23 = vsub.f32 %v48_v13, %v53_v22 }
 0x129   :  { %62 = vst.msk [vmem:[%s116_s3] sm:$0xff] %vm18_vm0, %v54_v23 }

</bundles_post_ra>
